<compile_context>
chip_gen: v6e
topology: v6e:2x2x1
jax: 0.10.0
libtpu: 0.0.40
codegen_flags: <defaults>
</compile_context>

<pallas_src>
import jax
import jax.numpy as jnp
from jax.experimental import pallas as pl
from jax.experimental.pallas import tpu as pltpu


def _cfd_kernel(x_ref, out_mul_ref, out_sub_ref):
    """One (row_tile, HW) tile: per-row mean/std gate + two elementwise outputs."""
    x = x_ref[...]
    inv_hw = jnp.float32(1.0 / x.shape[-1])

    # Two-pass statistics in f32 (matches PyTorch sum((x - mean)^2) / HW and is
    # robust to large DC offsets).  The extra vld/VPU work is free: this kernel
    # is HBM-bandwidth-bound.
    xf = x.astype(jnp.float32)
    mean = jnp.sum(xf, axis=-1, keepdims=True) * inv_hw
    d = xf - mean
    var = jnp.sum(d * d, axis=-1, keepdims=True) * inv_hw
    y = jax.nn.sigmoid(mean + jnp.sqrt(var))            # (tr, 1) f32 gate

    if x.dtype == jnp.float32:
        xy = xf * y
        out_mul_ref[...] = xy
        out_sub_ref[...] = xf - xy
    else:
        # Sub-32-bit inputs: apply in the input dtype so no full-tile f32
        # temporaries are needed for the apply path (native bf16 VALU on
        # v6e/v7x; upconverted by the compiler on v5e either way).
        yc = y.astype(x.dtype)
        xy = x * yc
        out_mul_ref[...] = xy
        out_sub_ref[...] = x - xy


def _vmem_budget_bytes():
    # Physical VMEM: 64 MiB/core on v7x, 128 MiB on v5e/v6e.  Leave headroom.
    try:
        cap = pltpu.get_tpu_info().vmem_capacity_bytes
    except Exception:
        cap = 64 * 1024 * 1024   # conservative fallback == v7x per-core VMEM
    return int(cap) * 3 // 4


# Per-row VMEM cost model: double-buffered (1 in + 2 out) blocks in the input
# dtype plus ~6 f32 full-tile temporaries inside the kernel body.
def _per_row_vmem_bytes(HW, itemsize):
    return 6 * HW * itemsize + 6 * HW * 4


_SLACK = 2 << 20            # compiler / internal scratch slack
_MAX_IN_BLOCK = 8 << 20     # mem-bound kernels saturate HBM well below 8 MiB tiles
_MIN_IN_BLOCK = 2 << 20     # v7x: keep per-step time >> 0.35 us fixed overhead


def _choose_row_tile(R, HW, itemsize, budget):
    """Pick the row-tile size tr (None => fall back to XLA for this shape)."""
    sublane = {4: 8, 2: 16, 1: 32}.get(itemsize, 8)
    row_bytes = max(1, HW * itemsize)
    per_row = _per_row_vmem_bytes(HW, itemsize)

    rows_budget = max(0, budget - _SLACK) // per_row      # fits in VMEM budget
    rows_cap = max(1, _MAX_IN_BLOCK // row_bytes)          # input-block byte cap
    tr_max = min(rows_budget, rows_cap)

    if tr_max >= R:
        return R                     # single block; block dim == array dim is legal
    if tr_max < sublane:
        return None                  # even a minimal sublane tile overflows VMEM

    tr = (tr_max // sublane) * sublane

    # v7x: prefer an even number of grid steps (2 TensorCores) as long as the
    # input block stays >= ~2 MiB; harmless on single-TC v5e/v6e.
    steps = pl.cdiv(R, tr)
    if steps > 1 and steps % 2 == 1:
        tr_cand = pl.cdiv(pl.cdiv(R, steps + 1), sublane) * sublane
        if (tr_cand >= sublane
                and pl.cdiv(R, tr_cand) % 2 == 0
                and tr_cand * row_bytes >= _MIN_IN_BLOCK):
            tr = tr_cand
    return tr


def _vmem_limit_bytes(tr, HW, itemsize, budget):
    need = tr * _per_row_vmem_bytes(HW, itemsize) + _SLACK
    return int(min(max(need, 16 << 20), budget))


def _cfd_ref(x):
    # Pure-JAX reference mirroring the PyTorch module (also the large-HW fallback).
    mean = jnp.mean(x, axis=(2, 3), keepdims=True)
    var = jnp.mean((x - mean) ** 2, axis=(2, 3), keepdims=True)
    y = jax.nn.sigmoid(mean + jnp.sqrt(var))
    return x * y, x - x * y


def cfd_forward(x):
    """x: [N, C, H, W]. Returns (x*y, x - x*y) with y = sigmoid(mean_c + std_c)."""
    N, C, H, W = x.shape
    R = N * C
    HW = H * W
    itemsize = jnp.dtype(x.dtype).itemsize

    budget = _vmem_budget_bytes()
    tr = _choose_row_tile(R, HW, itemsize, budget)
    if tr is None:
        # TODO(synk): for huge spatial maps (one sublane-multiple row tile no
        # longer fits in VMEM) add a second 'arbitrary' grid axis over HW with
        # running (s1, s2) accumulators and a second apply pass; XLA fallback
        # for now so such shapes remain correct.
        return _cfd_ref(x)

    # TODO(synk): when HW % 128 != 0 (e.g. 7x7, 14x14) the loads/stores are
    # masked partial-lane accesses; repack to a lane-dense layout (flat 1-D
    # blocks or [HW, tr]) to recover the wasted store bandwidth.
    # TODO(synk): on v7x consider pipeline_mode=pl.Buffered(3) on the input spec
    # to keep DMA ahead of the 3.2 TB/s HBM.

    x_flat = x.reshape(R, HW)                 # free view; no padding copy
    grid = (pl.cdiv(R, tr),)                  # edge block rows masked on store
    spec = pl.BlockSpec((tr, HW), lambda i: (i, 0))

    out_mul, out_sub = pl.pallas_call(
        _cfd_kernel,
        out_shape=(
            jax.ShapeDtypeStruct((R, HW), x.dtype),
            jax.ShapeDtypeStruct((R, HW), x.dtype),
        ),
        grid_spec=pltpu.PrefetchScalarGridSpec(
            num_scalar_prefetch=0,
            grid=grid,
            in_specs=[spec],
            out_specs=[spec, spec],
        ),
        compiler_params=pltpu.CompilerParams(
            dimension_semantics=("parallel",),
            vmem_limit_bytes=_vmem_limit_bytes(tr, HW, itemsize, budget),
        ),
    )(x_flat)

    # Pure-view reshapes back to NCHW (no slicing, no extra HBM traffic).
    return out_mul.reshape(N, C, H, W), out_sub.reshape(N, C, H, W)


if __name__ == "__main__":
    key = jax.random.PRNGKey(0)
    # CFD has no learned parameters (conv_du is just Sigmoid()), so only the
    # input is needed.
    x = jax.random.normal(key, (2, 4, 16, 16), dtype=jnp.float32)

    out_mul, out_sub = cfd_forward(x)
    out_mul = jax.block_until_ready(out_mul)
    out_sub = jax.block_until_ready(out_sub)

    ref_mul, ref_sub = _cfd_ref(x)
    assert jnp.allclose(out_mul, ref_mul, atol=1e-5, rtol=1e-5)
    assert jnp.allclose(out_sub, ref_sub, atol=1e-5, rtol=1e-5)

    print("KERNEL_OK")
</pallas_src>

<mosaic_0001>
module attributes {stable_mosaic.version = 11 : i64} {
  func.func @_cfd_kernel(%arg0: i32, %arg1: memref<8x256xf32, #tpu.memory_space<vmem>>, %arg2: memref<8x256xf32, #tpu.memory_space<vmem>>, %arg3: memref<8x256xf32, #tpu.memory_space<vmem>>) attributes {dimension_semantics = [#tpu.dimension_semantics<parallel>], iteration_bounds = array<i64: 1>, scalar_prefetch = 0 : i64, scratch_operands = 0 : i64, tpu.core_type = #tpu.core_type<tc>, window_params = [{transform_indices = @transform_0, window_bounds = array<i64: 8, 256>}, {transform_indices = @transform_1, window_bounds = array<i64: 8, 256>}, {transform_indices = @transform_2, window_bounds = array<i64: 8, 256>}]} {
    %c0 = arith.constant 0 : index
    %c0_0 = arith.constant 0 : index
    %0 = vector.load %arg1[%c0, %c0_0] : memref<8x256xf32, #tpu.memory_space<vmem>>, vector<8x256xf32>
    %cst = arith.constant dense<0.000000e+00> : vector<8xf32>
    %1 = vector.multi_reduction <add>, %0, %cst [1] : vector<8x256xf32> to vector<8xf32>
    %2 = vector.shape_cast %1 : vector<8xf32> to vector<8x1xf32>
    %cst_1 = arith.constant 3.906250e-03 : f32
    %3 = vector.broadcast %cst_1 : f32 to vector<8x1xf32>
    %4 = arith.mulf %2, %3 : vector<8x1xf32>
    %5 = vector.broadcast %4 : vector<8x1xf32> to vector<8x256xf32>
    %6 = arith.subf %0, %5 : vector<8x256xf32>
    %7 = arith.mulf %6, %6 : vector<8x256xf32>
    %cst_2 = arith.constant dense<0.000000e+00> : vector<8xf32>
    %8 = vector.multi_reduction <add>, %7, %cst_2 [1] : vector<8x256xf32> to vector<8xf32>
    %9 = vector.shape_cast %8 : vector<8xf32> to vector<8x1xf32>
    %cst_3 = arith.constant 3.906250e-03 : f32
    %10 = vector.broadcast %cst_3 : f32 to vector<8x1xf32>
    %11 = arith.mulf %9, %10 : vector<8x1xf32>
    %12 = math.sqrt %11 : vector<8x1xf32>
    %13 = arith.addf %4, %12 : vector<8x1xf32>
    %14 = arith.negf %13 : vector<8x1xf32>
    %15 = math.exp %14 : vector<8x1xf32>
    %cst_4 = arith.constant 1.000000e+00 : f32
    %16 = vector.broadcast %cst_4 : f32 to vector<8x1xf32>
    %17 = arith.addf %16, %15 : vector<8x1xf32>
    %18 = arith.divf %16, %17 : vector<8x1xf32>
    %19 = vector.broadcast %18 : vector<8x1xf32> to vector<8x256xf32>
    %20 = arith.mulf %0, %19 : vector<8x256xf32>
    %c0_5 = arith.constant 0 : index
    %c0_6 = arith.constant 0 : index
    %21 = vector.load %arg2[%c0_5, %c0_6] : memref<8x256xf32, #tpu.memory_space<vmem>>, vector<8x256xf32>
    tpu.vector_store %arg2[%c0_5, %c0_6], %20 {strides = array<i32>} : memref<8x256xf32, #tpu.memory_space<vmem>>, vector<8x256xf32>,
    %22 = arith.subf %0, %20 : vector<8x256xf32>
    %c0_7 = arith.constant 0 : index
    %c0_8 = arith.constant 0 : index
    %23 = vector.load %arg3[%c0_7, %c0_8] : memref<8x256xf32, #tpu.memory_space<vmem>>, vector<8x256xf32>
    tpu.vector_store %arg3[%c0_7, %c0_8], %22 {strides = array<i32>} : memref<8x256xf32, #tpu.memory_space<vmem>>, vector<8x256xf32>,
    return
  }
  func.func @transform_0(%arg0: i32) -> (i32, i32) {
    %c0_i32 = arith.constant 0 : i32
    %c0_i32_0 = arith.constant 0 : i32
    return %arg0, %c0_i32 : i32, i32
  }
  func.func @transform_1(%arg0: i32) -> (i32, i32) {
    %c0_i32 = arith.constant 0 : i32
    %c0_i32_0 = arith.constant 0 : i32
    return %arg0, %c0_i32 : i32, i32
  }
  func.func @transform_2(%arg0: i32) -> (i32, i32) {
    %c0_i32 = arith.constant 0 : i32
    %c0_i32_0 = arith.constant 0 : i32
    return %arg0, %c0_i32 : i32, i32
  }
}

</mosaic_0001>

<bundles_post_ra>
// kernel: tpu_custom_call.1
= control target key start
LH: loop header
LB: loop body
LE: loop exit
PB: predicated region body
PF: predicated region fallthrough
CT: control target
= control target key end

     0   :  { %8 = vsyncpa [#allocation3], 0  ;;  %s192_s0 = inlined_call_operand.hbm [shape: f32[8,256], index: 0, kind: input, shape index: {}]   ;;  %s193_s1 = inlined_call_operand.hbm [shape: f32[8,256], index: 1, kind: output, shape index: {0}]   ;;  %s194_s2 = inlined_call_operand.hbm [shape: f32[8,256], index: 2, kind: output, shape index: {1}]  }
   0x1   :  { %9 = vsyncpa [#allocation4], 0 }
   0x2   :  { %10 = vsyncpa [#allocation7], 0  ;;  %s165_s9 = smov [#allocation2]  }
   0x3   :  { %s17_s10 = sshll.u32 %s165_s9, 4  ;;  %s18_s10 = int_to_ptr.vmem [resolvable:$true] %s17_s10 }
   0x4   :  { %s107_s11 = scalar_lea.vmem %s18_s10, 256  ;;  %p112_p1 = scmp.lt.s32.totalorder %s18_s10, %s18_s10 }
   0x5   :  { %p108_p0 = scmp.ne.s32.totalorder %s18_s10, %s107_s11  ;;  %p113_p2 = scmp.lt.s32.totalorder %s107_s11, %s107_s11 }
   0x7   :  { %p114_p3 = por %p113_p2, %p112_p1 }
   0x9   :  { %p115_p4 = pnand %p114_p3, %p108_p0 }
   0xb   :  { %118 = shalt.err (!%p115_p4)
}
   0xc   :  { %20 = dma.hbm_to_vmem [thread:$0]  %s192_s0, 256, %s18_s10, [#allocation3]  }
   0xd   :  { %159 = dma.done.wait [#allocation3], 256  }
   0xe   :  { %160 = vsyncadd [#allocation3], 4294967040  ;;  %v24_v0 = vld [vmem:[#allocation2] sm:$0xff]  ;;  %v25_v1 = vld [vmem:[#allocation2 + $0x8] sm:$0xff]  ;;  %s166_s0 = smov [#allocation5]   ;;  %s167_s15 = smov [#allocation6]  }
   0xf   :  { %v26_v2 = vadd.f32 %v25_v1, %v24_v0  ;;  %s66_s14 = sshll.u32 %s166_s0, 4  ;;  %s76_s16 = sshll.u32 %s167_s15, 4  ;;  %s67_s14 = int_to_ptr.vmem [resolvable:$true] %s66_s14  ;;  %s77_s16 = int_to_ptr.vmem [resolvable:$true] %s76_s16 }
  0x10   :  { %s119_s17 = scalar_lea.vmem %s67_s14, 256  ;;  %p124_p6 = scmp.lt.s32.totalorder %s67_s14, %s67_s14 }
  0x11   :  { %27 = vadd.xlane.f32.xlu0 %v26_v2  ;;  %p120_p5 = scmp.ne.s32.totalorder %s67_s14, %s119_s17  ;;  %p125_p7 = scmp.lt.s32.totalorder %s119_s17, %s119_s17 }
  0x13   :  { %p126_p8 = por %p125_p7, %p124_p6 }
  0x15   :  { %p127_p9 = pnand %p126_p8, %p120_p5 }
  0x9a   :  { %v28_v3 = vpop.xlane.xlu0 %27 }
  0x9b   :  { %v29_v4 = vmul.f32 0.00390625, %v28_v3 }
  0x9d   :  { %v30_v5 = vsub.f32 %v24_v0, %v29_v4  ;;  %v31_v6 = vsub.f32 %v25_v1, %v29_v4 }
  0x9f   :  { %v32_v7 = vmul.f32 %v30_v5, %v30_v5  ;;  %v33_v8 = vmul.f32 %v31_v6, %v31_v6 }
  0xa1   :  { %v34_v9 = vadd.f32 %v33_v8, %v32_v7 }
  0xa3   :  { %35 = vadd.xlane.f32.xlu0 %v34_v9 }
 0x12c   :  { %v36_v10 = vpop.xlane.xlu0 %35 }
 0x12d   :  { %v37_v11 = vmul.f32 0.00390625, %v36_v10 }
 0x12f   :  { %93 = vrsqrt.f32 %v37_v11  ;;  %vm40_vm0 = vcmp.eq.f32.partialorder %v37_v11, inf  ;;  %v43_v14 = vand.u32 2147483648, %v37_v11  ;;  %vm42_vm1 = vcmp.eq.f32.partialorder %v37_v11, 0.0 }
 0x13c   :  { %v94_v12 = vpop.eup %93 }
 0x13d   :  { %v39_v13 = vmul.f32 %v94_v12, %v37_v11 }
 0x13f   :  { %v41_v15 = vsel %vm40_vm0, %v37_v11, %v39_v13 }
 0x140   :  { %v44_v16 = vsel %vm42_vm1, %v43_v14, %v41_v15 }
 0x141   :  { %v45_v17 = vadd.f32 %v44_v16, %v29_v4 }
 0x143   :  { %v89_v18 = vmul.f32 -1.442695, %v45_v17 }
 0x145   :  { %95 = vpow2.f32 %v89_v18 }
 0x152   :  { %v96_v19 = vpop.eup %95 }
 0x153   :  { %v49_v20 = vadd.f32 1.0, %v96_v19 }
 0x155   :  { %97 = vrcp.f32 %v49_v20 }
 0x162   :  { %v98_v21 = vpop.eup %97 }
 0x163   :  { %v52_v22 = vmul.f32 %v98_v21, %v24_v0  ;;  %v53_v23 = vmul.f32 %v98_v21, %v25_v1 }
 0x165   :  { %54 = vst [vmem:[#allocation5] sm:$0xff] %v52_v22  ;;  %55 = vst [vmem:[#allocation5 + $0x8] sm:$0xff] %v53_v23  ;;  %v56_v24 = vsub.f32 %v24_v0, %v52_v22  ;;  %v57_v25 = vsub.f32 %v25_v1, %v53_v23 }
 0x166   :  { %130 = shalt.err (!%p127_p9)
}
 0x167   :  { %69 = dma.vmem_to_hbm [thread:$0]  %s67_s14, 256, %s193_s1, [#allocation4]   ;;  %58 = vst [vmem:[#allocation6] sm:$0xff] %v56_v24  ;;  %59 = vst [vmem:[#allocation6 + $0x8] sm:$0xff] %v57_v25 }
 0x168   :  { %s139_s20 = scalar_lea.vmem %s77_s16, 256  ;;  %p144_p11 = scmp.lt.s32.totalorder %s77_s16, %s77_s16 }
 0x169   :  { %p140_p10 = scmp.ne.s32.totalorder %s77_s16, %s139_s20  ;;  %p145_p12 = scmp.lt.s32.totalorder %s139_s20, %s139_s20 }
 0x16b   :  { %p146_p13 = por %p145_p12, %p144_p11 }
 0x16d   :  { %p147_p0 = pnand %p146_p13, %p140_p10 }
 0x16f   :  { %150 = shalt.err (!%p147_p0)
}
 0x170   :  { %79 = dma.vmem_to_hbm [thread:$0]  %s77_s16, 256, %s194_s2, [#allocation7]  }
 0x171   :  { %161 = dma.done.wait [#allocation4], 256  }
 0x172   :  { %162 = vsyncadd [#allocation4], 4294967040 }
 0x173   :  { %163 = dma.done.wait [#allocation7], 256  }
 0x174   :  { %164 = vsyncadd [#allocation7], 4294967040 }
 0x175   :  { %86 = vsyncpa [#allocation3], 1 }
 0x176   :  { %87 = vsyncpa [#allocation4], 1 }
 0x177   :  { %88 = vsyncpa [#allocation7], 1 }

</bundles_post_ra>
